<compile_context>
chip_gen: v6e
topology: v6e:2x2x1
jax: 0.10.0
libtpu: 0.0.40
codegen_flags: <defaults>
</compile_context>

<pallas_src>
import jax
import jax.numpy as jnp
from jax.experimental import pallas as pl
from jax.experimental.pallas import tpu as pltpu

_EPS = 1e-8


def _round_up(x, m):
    return ((x + m - 1) // m) * m


def _vmem_budget_and_limit():
    """Per-generation VMEM sizing: tile budget = cap/2, scoped limit = 3*cap/4."""
    cap = 64 << 20   # conservative fallback (v7x per-TensorCore VMEM)
    try:
        info = pltpu.get_tpu_info()
        cap_attr = getattr(info, "vmem_capacity_bytes", None)
        if cap_attr:
            cap = int(cap_attr)
    except Exception:
        pass
    return cap // 2, (cap * 3) // 4


def _choose_row_tile(n_rows, d, k, in_itemsize, budget_bytes):
    """Largest row tile (multiple of 128, <= 16384) whose per-step VMEM fits the budget,
    capped so it (a) does not exceed the rounded-up row count and (b) leaves >= 2 grid
    steps when the row count allows it (v7x megacore sharding)."""
    def need(t):
        return (2 * t * d * in_itemsize    # x tile, double-buffered DMA
                + 2 * t * d * 4            # f32 copy + elementwise square inside the kernel
                + 2 * k * t * 4            # (K, TS) f32 output tile, double-buffered DMA
                + 4 * k * t * 4            # (K, TS) f32 epilogue temporaries
                + 8 * t * 4                # (1, TS) rows: labels, xsq, inv_xnorm, ...
                + 2 * k * d * in_itemsize  # class table (resident)
                + (1 << 16))               # small residents + slack

    ts = 16384
    while ts > 128 and need(ts) > budget_bytes:
        ts //= 2
    ts = max(ts, 128)

    n_up = _round_up(max(n_rows, 1), 128)
    if n_up >= 256:   # ensure >= 2 grid steps for the parallel row axis (v7x: 2 TCs)
        ts = min(ts, _round_up((n_up + 1) // 2, 128))
    return min(ts, n_up)


def simrel_kernel(any_inf_ref, x_ref, lbl_ref, c_ref, cinv_ref, cinf_ref, ones_ref, o_ref):
    # any_inf_ref: (1,)    int32 SMEM scalar prefetch: 1 iff any class vector has +/-inf
    # x_ref:       (TS, D) input rows (native dtype)
    # lbl_ref:     (1, TS) int32 labels (lane layout)
    # c_ref:       (K, D)  class average vectors (same dtype as x)
    # cinv_ref:    (K, 1)  f32 1 / max(||class_avgs[k]||, sqrt(eps))
    # cinf_ref:    (K, 1)  f32 1.0 where class_avgs[k] contains +/-inf
    # ones_ref:    (1, D)  f32 ones row (MXU row-norm matmul)
    # o_ref:       (K, TS) f32 output (transposed; wrapper un-transposes)
    x = x_ref[...]
    c = c_ref[...]
    K = c.shape[0]
    TS = x.shape[0]
    eps = jnp.float32(_EPS)
    dn = (((1,), (1,)), ((), ()))

    # Main MXU matmul: (K, D) x (TS, D)^T -> (K, TS), f32 accumulation, native-dtype operands.
    dots = jax.lax.dot_general(c, x, dn, preferred_element_type=jnp.float32)

    # Row sum-of-squares on the (mostly idle) MXU: ones(1,D) x (x*x)^T -> (1, TS), already
    # lane-major -- avoids the XLU lane reduce and the sublane->lane relayout.
    xf = x.astype(jnp.float32)
    xsq_row = jax.lax.dot_general(ones_ref[...], xf * xf, dn,
                                  preferred_element_type=jnp.float32)       # (1, TS)
    inv_xnorm = jax.lax.rsqrt(jnp.maximum(xsq_row, eps))                    # 1/max(||x||, sqrt(eps))

    # Cosine with factorized eps clamp (equivalent for non-degenerate norms).
    sims = dots * cinv_ref[...] * inv_xnorm                                  # (K, TS)

    @pl.when(any_inf_ref[0] == 0)
    def _():
        # Steady state: every class initialized -> plain cosine similarities.
        o_ref[...] = sims.astype(o_ref.dtype)

    @pl.when(any_inf_ref[0] != 0)
    def _():
        # Some classes uninitialized (+/-inf rows): self-similarity if the label matches, else -1.
        self_sim = xsq_row * (inv_xnorm * inv_xnorm)                         # (1, TS), ~1.0
        kidx = jax.lax.broadcasted_iota(jnp.int32, (K, TS), 0)
        match = kidx == lbl_ref[...]
        inf_mask = cinf_ref[...] > 0.5                                       # (K, 1)
        out = jnp.where(inf_mask,
                        jnp.where(match, self_sim, jnp.float32(-1.0)),
                        sims)
        o_ref[...] = out.astype(o_ref.dtype)


def simrel_forward(inputs, labels, class_avgs):
    """inputs: (B, S, D); labels: (B, S) int; class_avgs: (K, D) -> (B, S, K) f32."""
    B, S, D = inputs.shape
    K = class_avgs.shape[0]
    N = B * S
    in_dtype = inputs.dtype
    itemsize = jnp.dtype(in_dtype).itemsize

    budget, vmem_limit = _vmem_budget_and_limit()
    TS = _choose_row_tile(N, D, K, itemsize, budget)
    num_tiles = (N + TS - 1) // TS
    Npad = num_tiles * TS

    # No padded copy of x (the dominant HBM stream); Pallas masks the ragged last block.
    # Only the tiny label row is padded so the edge tile sees deterministic labels.
    x = inputs.reshape(N, D)
    lbl = labels.astype(jnp.int32).reshape(N)
    if Npad != N:
        lbl = jnp.pad(lbl, (0, Npad - N), constant_values=-1)   # -1 matches no class
    lbl = lbl.reshape(1, Npad)

    # Grid-invariant class-side quantities, hoisted out of the kernel.
    c = class_avgs.astype(in_dtype)          # MXU operand matches input dtype
    cf = c.astype(jnp.float32)               # norms from the *same* values the MXU sees
    csq = jnp.sum(cf * cf, axis=-1, keepdims=True)                                  # (K, 1)
    cinv = jax.lax.rsqrt(jnp.maximum(csq, jnp.float32(_EPS)))                       # (K, 1)
    cinf = jnp.any(jnp.isinf(class_avgs), axis=-1, keepdims=True).astype(jnp.float32)  # (K, 1)
    any_inf = jnp.any(jnp.isinf(class_avgs)).astype(jnp.int32).reshape(1)           # (1,)
    ones_row = jnp.ones((1, D), jnp.float32)

    out_kn = pl.pallas_call(
        simrel_kernel,
        out_shape=jax.ShapeDtypeStruct((K, N), jnp.float32),
        grid_spec=pltpu.PrefetchScalarGridSpec(
            num_scalar_prefetch=1,
            grid=(num_tiles,),
            in_specs=[
                pl.BlockSpec((TS, D), lambda i, flag: (i, 0)),   # input row tile
                pl.BlockSpec((1, TS), lambda i, flag: (0, i)),   # label row (lane layout)
                pl.BlockSpec((K, D), lambda i, flag: (0, 0)),    # class table (resident)
                pl.BlockSpec((K, 1), lambda i, flag: (0, 0)),    # 1/||class|| (resident)
                pl.BlockSpec((K, 1), lambda i, flag: (0, 0)),    # class isinf flags (resident)
                pl.BlockSpec((1, D), lambda i, flag: (0, 0)),    # ones row (resident)
            ],
            out_specs=pl.BlockSpec((K, TS), lambda i, flag: (0, i)),
        ),
        compiler_params=pltpu.CompilerParams(
            dimension_semantics=("parallel",),
            vmem_limit_bytes=vmem_limit,
        ),
    )(any_inf, x, lbl, c, cinv, cinf, ones_row)

    # Un-transpose back to the module's (B, S, K) contract. (If a downstream consumer can take
    # the (K, N) layout directly, drop this relayout and save ~2*K*N*4 bytes of HBM traffic.)
    return jnp.transpose(out_kn).reshape(B, S, K)


def simrel_reference(inputs, labels, class_avgs, eps=_EPS):
    """Pure-JAX reference (eval-mode forward)."""
    x = inputs.astype(jnp.float32)
    ca = class_avgs.astype(jnp.float32)
    xsq = jnp.sum(x * x, axis=-1, keepdims=True)                          # (B,S,1)
    xnorm = jnp.sqrt(xsq)
    cnorm = jnp.sqrt(jnp.sum(ca * ca, axis=-1))                           # (K,)
    dots = jnp.einsum("bsd,kd->bsk", x, ca)
    sims = dots / jnp.maximum(xnorm * cnorm[None, None, :], eps)
    self_sim = xsq / jnp.maximum(xsq, eps)
    inf_mask = jnp.any(jnp.isinf(ca), axis=-1)                            # (K,)
    match = labels[..., None] == jnp.arange(class_avgs.shape[0])
    return jnp.where(inf_mask[None, None, :],
                     jnp.where(match, self_sim, -1.0),
                     sims)


if __name__ == "__main__":
    B, S, D, K = 2, 8, 32, 4   # batch, seq, input_dim, num_classes
    key = jax.random.PRNGKey(0)
    k1, k2, k3 = jax.random.split(key, 3)

    inputs = jax.random.normal(k1, (B, S, D), dtype=jnp.float32)
    labels = jax.random.randint(k2, (B, S), 0, K, dtype=jnp.int32)
    class_avgs = jax.random.normal(k3, (K, D), dtype=jnp.float32)
    # Class 2 "uninitialized" (+inf): exercises the isinf branch (any_inf != 0 path).
    class_avgs_inf = class_avgs.at[2].set(jnp.inf)

    out = simrel_forward(inputs, labels, class_avgs_inf)
    jax.block_until_ready(out)
    ref = simrel_reference(inputs, labels, class_avgs_inf)
    assert out.shape == (B, S, K)
    assert jnp.allclose(out, ref, atol=1e-3, rtol=1e-3), "mismatch vs reference (inf class)"

    # All classes initialized: exercises the gated steady-state path (any_inf == 0).
    out2 = simrel_forward(inputs, labels, class_avgs)
    jax.block_until_ready(out2)
    ref2 = simrel_reference(inputs, labels, class_avgs)
    assert jnp.allclose(out2, ref2, atol=1e-3, rtol=1e-3), "mismatch vs reference (finite)"

    print("KERNEL_OK")
</pallas_src>

<mosaic_0001>
module attributes {stable_mosaic.version = 11 : i64} {
  func.func @simrel_kernel(%arg0: i32, %arg1: memref<1xi32, #tpu.memory_space<smem>>, %arg2: memref<128x32xf32, #tpu.memory_space<vmem>>, %arg3: memref<1x128xi32, #tpu.memory_space<vmem>>, %arg4: memref<4x32xf32, #tpu.memory_space<vmem>>, %arg5: memref<4x1xf32, #tpu.memory_space<vmem>>, %arg6: memref<4x1xf32, #tpu.memory_space<vmem>>, %arg7: memref<1x32xf32, #tpu.memory_space<vmem>>, %arg8: memref<4x128xf32, #tpu.memory_space<vmem>>) attributes {dimension_semantics = [#tpu.dimension_semantics<parallel>], iteration_bounds = array<i64: 1>, scalar_prefetch = 1 : i64, scratch_operands = 0 : i64, tpu.core_type = #tpu.core_type<tc>, window_params = [{transform_indices = @transform_0, window_bounds = array<i64: 128, 32>}, {transform_indices = @transform_1, window_bounds = array<i64: 1, 128>}, {pipeline_mode = #tpu.pipeline_mode<synchronous>, transform_indices = @transform_2, window_bounds = array<i64: 4, 32>}, {pipeline_mode = #tpu.pipeline_mode<synchronous>, transform_indices = @transform_3, window_bounds = array<i64: 4, 1>}, {pipeline_mode = #tpu.pipeline_mode<synchronous>, transform_indices = @transform_4, window_bounds = array<i64: 4, 1>}, {pipeline_mode = #tpu.pipeline_mode<synchronous>, transform_indices = @transform_5, window_bounds = array<i64: 1, 32>}, {transform_indices = @transform_6, window_bounds = array<i64: 4, 128>}]} {
    %c0 = arith.constant 0 : index
    %c0_0 = arith.constant 0 : index
    %0 = vector.load %arg2[%c0, %c0_0] : memref<128x32xf32, #tpu.memory_space<vmem>>, vector<128x32xf32>
    %c0_1 = arith.constant 0 : index
    %c0_2 = arith.constant 0 : index
    %1 = vector.load %arg4[%c0_1, %c0_2] : memref<4x32xf32, #tpu.memory_space<vmem>>, vector<4x32xf32>
    %cst = arith.constant dense<0.000000e+00> : vector<4x128xf32>
    %2 = tpu.matmul %1, %0, %cst {dimension_numbers = #tpu.dot_dimension_numbers<[1], [1], [0], [0], [0, 0, 1, 0], [], []>} : vector<4x32xf32>, vector<128x32xf32>, vector<4x128xf32> -> vector<4x128xf32>
    %c0_3 = arith.constant 0 : index
    %c0_4 = arith.constant 0 : index
    %3 = vector.load %arg7[%c0_3, %c0_4] : memref<1x32xf32, #tpu.memory_space<vmem>>, vector<1x32xf32>
    %4 = arith.mulf %0, %0 : vector<128x32xf32>
    %cst_5 = arith.constant dense<0.000000e+00> : vector<1x128xf32>
    %5 = tpu.matmul %3, %4, %cst_5 {dimension_numbers = #tpu.dot_dimension_numbers<[1], [1], [0], [0], [0, 0, 1, 0], [], []>} : vector<1x32xf32>, vector<128x32xf32>, vector<1x128xf32> -> vector<1x128xf32>
    %cst_6 = arith.constant 9.99999993E-9 : f32
    %6 = vector.broadcast %cst_6 : f32 to vector<1x128xf32>
    %7 = arith.maximumf %5, %6 : vector<1x128xf32>
    %8 = math.rsqrt %7 : vector<1x128xf32>
    %c0_7 = arith.constant 0 : index
    %c0_8 = arith.constant 0 : index
    %9 = vector.load %arg5[%c0_7, %c0_8] : memref<4x1xf32, #tpu.memory_space<vmem>>, vector<4x1xf32>
    %10 = vector.broadcast %9 : vector<4x1xf32> to vector<4x128xf32>
    %11 = arith.mulf %2, %10 : vector<4x128xf32>
    %12 = vector.broadcast %8 : vector<1x128xf32> to vector<4x128xf32>
    %13 = arith.mulf %11, %12 : vector<4x128xf32>
    %c0_9 = arith.constant 0 : index
    %14 = memref.load %arg1[%c0_9] : memref<1xi32, #tpu.memory_space<smem>>
    %c0_i32 = arith.constant 0 : i32
    %15 = arith.cmpi eq, %14, %c0_i32 : i32
    %16 = arith.extui %15 : i1 to i32
    %c0_i32_10 = arith.constant 0 : i32
    %17 = arith.cmpi ne, %16, %c0_i32_10 : i32
    scf.if %17 {
      %c0_14 = arith.constant 0 : index
      %c0_15 = arith.constant 0 : index
      %22 = vector.load %arg8[%c0_14, %c0_15] : memref<4x128xf32, #tpu.memory_space<vmem>>, vector<4x128xf32>
      tpu.vector_store %arg8[%c0_14, %c0_15], %13 {strides = array<i32>} : memref<4x128xf32, #tpu.memory_space<vmem>>, vector<4x128xf32>,
    } else {
    }
    %c0_11 = arith.constant 0 : index
    %18 = memref.load %arg1[%c0_11] : memref<1xi32, #tpu.memory_space<smem>>
    %c0_i32_12 = arith.constant 0 : i32
    %19 = arith.cmpi ne, %18, %c0_i32_12 : i32
    %20 = arith.extui %19 : i1 to i32
    %c0_i32_13 = arith.constant 0 : i32
    %21 = arith.cmpi ne, %20, %c0_i32_13 : i32
    scf.if %21 {
      %22 = arith.mulf %8, %8 : vector<1x128xf32>
      %23 = arith.mulf %5, %22 : vector<1x128xf32>
      %24 = tpu.iota {dimensions = array<i32: 0>} : vector<4x128xi32>
      %c0_14 = arith.constant 0 : index
      %c0_15 = arith.constant 0 : index
      %25 = vector.load %arg3[%c0_14, %c0_15] : memref<1x128xi32, #tpu.memory_space<vmem>>, vector<1x128xi32>
      %26 = vector.broadcast %25 : vector<1x128xi32> to vector<4x128xi32>
      %27 = arith.cmpi eq, %24, %26 : vector<4x128xi32>
      %c0_16 = arith.constant 0 : index
      %c0_17 = arith.constant 0 : index
      %28 = vector.load %arg6[%c0_16, %c0_17] : memref<4x1xf32, #tpu.memory_space<vmem>>, vector<4x1xf32>
      %cst_18 = arith.constant 5.000000e-01 : f32
      %29 = vector.broadcast %cst_18 : f32 to vector<4x1xf32>
      %30 = arith.cmpf ogt, %28, %29 : vector<4x1xf32>
      %cst_19 = arith.constant -1.000000e+00 : f32
      %31 = vector.shape_cast %23 : vector<1x128xf32> to vector<1x128xf32>
      %32 = vector.broadcast %31 : vector<1x128xf32> to vector<4x128xf32>
      %33 = vector.broadcast %cst_19 : f32 to vector<4x128xf32>
      %34 = arith.select %27, %32, %33 : vector<4x128xi1>, vector<4x128xf32>
      %35 = vector.shape_cast %30 : vector<4x1xi1> to vector<4x1xi1>
      %36 = vector.broadcast %35 : vector<4x1xi1> to vector<4x128xi1>
      %37 = arith.select %36, %34, %13 : vector<4x128xi1>, vector<4x128xf32>
      %c0_20 = arith.constant 0 : index
      %c0_21 = arith.constant 0 : index
      %38 = vector.load %arg8[%c0_20, %c0_21] : memref<4x128xf32, #tpu.memory_space<vmem>>, vector<4x128xf32>
      tpu.vector_store %arg8[%c0_20, %c0_21], %37 {strides = array<i32>} : memref<4x128xf32, #tpu.memory_space<vmem>>, vector<4x128xf32>,
    } else {
    }
    return
  }
  func.func @transform_0(%arg0: i32, %arg1: memref<1xi32, #tpu.memory_space<smem>>) -> (i32, i32) {
    %c0_i32 = arith.constant 0 : i32
    %c0_i32_0 = arith.constant 0 : i32
    return %arg0, %c0_i32 : i32, i32
  }
  func.func @transform_1(%arg0: i32, %arg1: memref<1xi32, #tpu.memory_space<smem>>) -> (i32, i32) {
    %c0_i32 = arith.constant 0 : i32
    %c0_i32_0 = arith.constant 0 : i32
    return %c0_i32, %arg0 : i32, i32
  }
  func.func @transform_2(%arg0: i32, %arg1: memref<1xi32, #tpu.memory_space<smem>>) -> (i32, i32) {
    %c0_i32 = arith.constant 0 : i32
    %c0_i32_0 = arith.constant 0 : i32
    %c0_i32_1 = arith.constant 0 : i32
    return %c0_i32, %c0_i32_0 : i32, i32
  }
  func.func @transform_3(%arg0: i32, %arg1: memref<1xi32, #tpu.memory_space<smem>>) -> (i32, i32) {
    %c0_i32 = arith.constant 0 : i32
    %c0_i32_0 = arith.constant 0 : i32
    %c0_i32_1 = arith.constant 0 : i32
    return %c0_i32, %c0_i32_0 : i32, i32
  }
  func.func @transform_4(%arg0: i32, %arg1: memref<1xi32, #tpu.memory_space<smem>>) -> (i32, i32) {
    %c0_i32 = arith.constant 0 : i32
    %c0_i32_0 = arith.constant 0 : i32
    %c0_i32_1 = arith.constant 0 : i32
    return %c0_i32, %c0_i32_0 : i32, i32
  }
  func.func @transform_5(%arg0: i32, %arg1: memref<1xi32, #tpu.memory_space<smem>>) -> (i32, i32) {
    %c0_i32 = arith.constant 0 : i32
    %c0_i32_0 = arith.constant 0 : i32
    %c0_i32_1 = arith.constant 0 : i32
    return %c0_i32, %c0_i32_0 : i32, i32
  }
  func.func @transform_6(%arg0: i32, %arg1: memref<1xi32, #tpu.memory_space<smem>>) -> (i32, i32) {
    %c0_i32 = arith.constant 0 : i32
    %c0_i32_0 = arith.constant 0 : i32
    return %c0_i32, %arg0 : i32, i32
  }
}

</mosaic_0001>

<bundles_post_ra>
// kernel: tpu_custom_call.1
= control target key start
LH: loop header
LB: loop body
LE: loop exit
PB: predicated region body
PF: predicated region fallthrough
CT: control target
= control target key end

     0   :  { %s721_s0 = inlined_call_operand.<no memory space> [shape: s32[1], index: 0, kind: input, shape index: {}]   ;;  %s722_s1 = inlined_call_operand.hbm [shape: f32[16,32], index: 1, kind: input, shape index: {}]   ;;  %s723_s2 = inlined_call_operand.vmem [shape: s32[1,128], index: 2, kind: input, shape index: {}]   ;;  %s724_s3 = inlined_call_operand.vmem [shape: f32[4,32], index: 3, kind: input, shape index: {}]   ;;  %s725_s4 = inlined_call_operand.vmem [shape: f32[4,1], index: 4, kind: input, shape index: {}]   ;;  %s726_s5 = inlined_call_operand.vmem [shape: f32[4,1], index: 5, kind: input, shape index: {}]   ;;  %s727_s6 = inlined_call_operand.vmem [shape: f32[1,32], index: 6, kind: input, shape index: {}]   ;;  %s728_s7 = inlined_call_operand.hbm [shape: f32[4,16], index: 7, kind: output, shape index: {}]  }
   0x1   :  { %12 = sst [smem:[#allocation3]] %s721_s0 }
   0x2   :  { %13 = vsyncpa [#allocation5], 0 }
   0x3   :  { %14 = vsyncpa [#allocation6], 0 }
   0x4   :  { %19 = vsyncadd [#allocation5], 1792  ;;  %s578_s26 = smov [#allocation4]  }
   0x5   :  { %s20_s27 = sshll.u32 %s578_s26, 4  ;;  %s21_s27 = int_to_ptr.vmem [resolvable:$true] %s20_s27 }
   0x6   :  { %s542_s28 = scalar_lea.vmem %s21_s27, 256  ;;  %s546_s29 = scalar_lea.vmem %s21_s27, 2048 }
   0x7   :  { %p543_p0 = scmp.ne.s32.totalorder %s21_s27, %s542_s28  ;;  %p547_p1 = scmp.lt.s32.totalorder %s21_s27, %s21_s27 }
   0x8   :  { %p548_p2 = scmp.lt.s32.totalorder %s546_s29, %s542_s28 }
   0xa   :  { %p549_p3 = por %p548_p2, %p547_p1 }
   0xc   :  { %p550_p4 = pnand %p549_p3, %p543_p0 }
   0xe   :  { %553 = shalt.err (!%p550_p4)
}
   0xf   :  { %s579_s30 = smov 128   ;;  %s580_s8 = smov 8  }
  0x10   :  { %26 = dma.hbm_to_vmem [thread:$0]  %s722_s1, 256, %s21_s27, [#allocation5], %s579_s30, %s579_s30, %s580_s8  }
  0x11   :  { %574 = dma.done.wait [#allocation5], 2048  }
  0x12   :  { %575 = vsyncadd [#allocation5], 4294965248  ;;  %s632_s0 = sld [smem:[#allocation3]]  ;;  %v581_v0 = vmov 0.0   ;;  %vm582_vm0 = vmmov 0   ;;  %v583_v1 = vmov 0   ;;  %v326_v42 = vlaneseq }
  0x13   :  { %487 = vmatprep.subr.mxu1 %v581_v0  ;;  %452 = vmatprep.subr.mxu0 %v581_v0  ;;  %v55_v2 = vld [vmem:[#allocation4 + $0x78] sm:$0xff]  ;;  %vm57_vm1 = vcmask 261120   ;;  %v54_v3 = vld [vmem:[#allocation4 + $0x70] sm:$0xff]  ;;  %v53_v6 = vld [vmem:[#allocation4 + $0x68] sm:$0xff] }
  0x14   :  { %519 = vmatprep.mubr.msk.f32.mxu1 %vm582_vm0, %v581_v0  ;;  %484 = vmatprep.mubr.msk.f32.mxu0 %vm582_vm0, %v581_v0  ;;  %v195_v4 = vmul.f32 %v55_v2, %v55_v2  ;;  %v194_v5 = vmul.f32 %v54_v3, %v54_v3  ;;  %v319_v7 = vld [vmem:[%s725_s4] sm:$0xf]  ;;  %v193_v8 = vmul.f32 %v53_v6, %v53_v6  ;;  %v51_v11 = vld [vmem:[#allocation4 + $0x58] sm:$0xff]  ;;  %v50_v13 = vld [vmem:[#allocation4 + $0x50] sm:$0xff]  ;;  %v327_v43 = vshrl.u32 %v326_v42, 7 }
  0x15   :  { %530 = vset.pattern.permute.xlu0 %v583_v1  ;;  %453 = vmatpush3.xpose.msk.msra.mxu0 %vm57_vm1, %v55_v2  ;;  %v52_v9 = vld [vmem:[#allocation4 + $0x60] sm:$0xff]  ;;  %v191_v12 = vmul.f32 %v51_v11, %v51_v11  ;;  %v190_v14 = vmul.f32 %v50_v13, %v50_v13  ;;  %v49_v15 = vld [vmem:[#allocation4 + $0x48] sm:$0xff]  ;;  %v47_v19 = vld [vmem:[#allocation4 + $0x38] sm:$0xff] }
  0x16   :  { %454 = vmatprep.subr.mxu0 %v581_v0  ;;  %488 = vmatpush3.xpose.msk.msra.mxu1 %vm57_vm1, %v195_v4  ;;  %v192_v10 = vmul.f32 %v52_v9, %v52_v9  ;;  %v189_v16 = vmul.f32 %v49_v15, %v49_v15  ;;  %v48_v17 = vld [vmem:[#allocation4 + $0x40] sm:$0xff]  ;;  %v187_v20 = vmul.f32 %v47_v19, %v47_v19  ;;  %v46_v21 = vld [vmem:[#allocation4 + $0x30] sm:$0xff]  ;;  %v45_v23 = vld [vmem:[#allocation4 + $0x28] sm:$0xff]  ;;  %v328_v45 = vsub.s32 0, %v327_v43 }
  0x17   :  { %489 = vmatprep.subr.mxu1 %v581_v0  ;;  %322 = vperm.xlu0 %530, %v319_v7   ;;  %v188_v18 = vmul.f32 %v48_v17, %v48_v17  ;;  %v186_v22 = vmul.f32 %v46_v21, %v46_v21  ;;  %v185_v24 = vmul.f32 %v45_v23, %v45_v23  ;;  %v44_v25 = vld [vmem:[#allocation4 + $0x20] sm:$0xff]  ;;  %v43_v27 = vld [vmem:[#allocation4 + $0x18] sm:$0xff]  ;;  %v42_v29 = vld [vmem:[#allocation4 + $0x10] sm:$0xff] }
  0x18   :  { %v184_v26 = vmul.f32 %v44_v25, %v44_v25  ;;  %v183_v28 = vmul.f32 %v43_v27, %v43_v27  ;;  %v182_v30 = vmul.f32 %v42_v29, %v42_v29  ;;  %v41_v31 = vld [vmem:[#allocation4 + $0x8] sm:$0xff]  ;;  %v40_v33 = vld [vmem:[#allocation4] sm:$0xff]  ;;  %p415_p5 = scmp.ne.s32.totalorder %s632_s0, 0 }
  0x19   :  { %455 = vmatpush3.xpose.msk.msra.mxu0 %vm57_vm1, %v54_v3  ;;  %v181_v32 = vmul.f32 %v41_v31, %v41_v31  ;;  %v180_v34 = vmul.f32 %v40_v33, %v40_v33  ;;  %v56_v35 = vld [vmem:[%s724_s3] sm:$0xf] }
  0x1a   :  { %456 = vmatprep.subr.mxu0 %v581_v0  ;;  %490 = vmatpush3.xpose.msk.msra.mxu1 %vm57_vm1, %v194_v5  ;;  %v179_v36 = vld [vmem:[%s727_s6] sm:$0x1] }
  0x1b   :  { %491 = vmatprep.subr.mxu1 %v581_v0 }
  0x1d   :  { %457 = vmatpush3.xpose.msk.msra.mxu0 %vm57_vm1, %v53_v6 }
  0x1e   :  { %458 = vmatprep.subr.mxu0 %v581_v0  ;;  %492 = vmatpush3.xpose.msk.msra.mxu1 %vm57_vm1, %v193_v8 }
  0x1f   :  { %493 = vmatprep.subr.mxu1 %v581_v0 }
  0x21   :  { %459 = vmatpush3.xpose.msk.msra.mxu0 %vm57_vm1, %v52_v9 }
  0x22   :  { %460 = vmatprep.subr.mxu0 %v581_v0  ;;  %494 = vmatpush3.xpose.msk.msra.mxu1 %vm57_vm1, %v192_v10 }
  0x23   :  { %495 = vmatprep.subr.mxu1 %v581_v0 }
  0x25   :  { %461 = vmatpush3.xpose.msk.msra.mxu0 %vm57_vm1, %v51_v11 }
  0x26   :  { %462 = vmatprep.subr.mxu0 %v581_v0  ;;  %496 = vmatpush3.xpose.msk.msra.mxu1 %vm57_vm1, %v191_v12 }
  0x27   :  { %497 = vmatprep.subr.mxu1 %v581_v0 }
  0x29   :  { %463 = vmatpush3.xpose.msk.msra.mxu0 %vm57_vm1, %v50_v13 }
  0x2a   :  { %464 = vmatprep.subr.mxu0 %v581_v0  ;;  %498 = vmatpush3.xpose.msk.msra.mxu1 %vm57_vm1, %v190_v14 }
  0x2b   :  { %499 = vmatprep.subr.mxu1 %v581_v0 }
  0x2d   :  { %465 = vmatpush3.xpose.msk.msra.mxu0 %vm57_vm1, %v49_v15 }
  0x2e   :  { %466 = vmatprep.subr.mxu0 %v581_v0  ;;  %500 = vmatpush3.xpose.msk.msra.mxu1 %vm57_vm1, %v189_v16 }
  0x2f   :  { %501 = vmatprep.subr.mxu1 %v581_v0 }
  0x31   :  { %467 = vmatpush3.xpose.msk.msra.mxu0 %vm57_vm1, %v48_v17 }
  0x32   :  { %468 = vmatprep.subr.mxu0 %v581_v0  ;;  %502 = vmatpush3.xpose.msk.msra.mxu1 %vm57_vm1, %v188_v18 }
  0x33   :  { %503 = vmatprep.subr.mxu1 %v581_v0 }
  0x35   :  { %469 = vmatpush3.xpose.msk.msra.mxu0 %vm57_vm1, %v47_v19 }
  0x36   :  { %470 = vmatprep.subr.mxu0 %v581_v0  ;;  %504 = vmatpush3.xpose.msk.msra.mxu1 %vm57_vm1, %v187_v20 }
  0x37   :  { %505 = vmatprep.subr.mxu1 %v581_v0 }
  0x39   :  { %471 = vmatpush3.xpose.msk.msra.mxu0 %vm57_vm1, %v46_v21 }
  0x3a   :  { %472 = vmatprep.subr.mxu0 %v581_v0  ;;  %506 = vmatpush3.xpose.msk.msra.mxu1 %vm57_vm1, %v186_v22 }
  0x3b   :  { %507 = vmatprep.subr.mxu1 %v581_v0 }
  0x3d   :  { %473 = vmatpush3.xpose.msk.msra.mxu0 %vm57_vm1, %v45_v23 }
  0x3e   :  { %474 = vmatprep.subr.mxu0 %v581_v0  ;;  %508 = vmatpush3.xpose.msk.msra.mxu1 %vm57_vm1, %v185_v24 }
  0x3f   :  { %509 = vmatprep.subr.mxu1 %v581_v0 }
  0x41   :  { %475 = vmatpush3.xpose.msk.msra.mxu0 %vm57_vm1, %v44_v25 }
  0x42   :  { %476 = vmatprep.subr.mxu0 %v581_v0  ;;  %510 = vmatpush3.xpose.msk.msra.mxu1 %vm57_vm1, %v184_v26 }
  0x43   :  { %511 = vmatprep.subr.mxu1 %v581_v0 }
  0x45   :  { %477 = vmatpush3.xpose.msk.msra.mxu0 %vm57_vm1, %v43_v27 }
  0x46   :  { %478 = vmatprep.subr.mxu0 %v581_v0  ;;  %512 = vmatpush3.xpose.msk.msra.mxu1 %vm57_vm1, %v183_v28 }
  0x47   :  { %513 = vmatprep.subr.mxu1 %v581_v0 }
  0x49   :  { %479 = vmatpush3.xpose.msk.msra.mxu0 %vm57_vm1, %v42_v29 }
  0x4a   :  { %480 = vmatprep.subr.mxu0 %v581_v0  ;;  %514 = vmatpush3.xpose.msk.msra.mxu1 %vm57_vm1, %v182_v30 }
  0x4b   :  { %515 = vmatprep.subr.mxu1 %v581_v0 }
  0x4d   :  { %481 = vmatpush3.xpose.msk.msra.mxu0 %vm57_vm1, %v41_v31 }
  0x4e   :  { %482 = vmatprep.subr.mxu0 %v581_v0  ;;  %516 = vmatpush3.xpose.msk.msra.mxu1 %vm57_vm1, %v181_v32 }
  0x4f   :  { %517 = vmatprep.subr.mxu1 %v581_v0 }
  0x51   :  { %483 = vmatpush3.xpose.msk.msra.mxu0 %vm57_vm1, %v40_v33 }
  0x52   :  { %518 = vmatpush3.xpose.msk.msra.mxu1 %vm57_vm1, %v180_v34 }
  0x54   :  { %485 = vmatmul.mubr.msk.f32.vlgmr.msra.gmra.mxu0 %vm57_vm1, %v56_v35 }
  0x55   :  { %520 = vmatmul.mubr.msk.f32.vlgmr.msra.gmra.mxu1 %vm57_vm1, %v179_v36 }
  0x92   :  { %v323_v44 = vpop.permute.xlu0 %322 }
 0x114   :  { %v175_v37 = vpop.f32.mrf.mxu0 }
 0x115   :  { %v313_v38 = vpop.f32.mrf.mxu1  ;;  %v325_v46 = vmul.f32 %v323_v44, %v175_v37 }
 0x116   :  { %v486_v39 = vpop.f32.mrf.mxu0  ;;  %v317_v40 = vmax.f32 %v313_v38, 1e-08 }
 0x117   :  { %v521_v41 = vpop.f32.mrf.mxu1 }
 0x118   :  { %531 = vrsqrt.f32 %v317_v40 }
 0x124   :  { %335 = sbr.rel (%p415_p5) target bundleno = 299 (0x12b), region = 33 }
 0x125   :  { %v532_v47 = vpop.eup %531 }
 0x126   :  { %v329_v48 = vrot.slane %v532_v47, %v328_v45 }
 0x128   :  { %v330_v49 = vmul.f32 %v329_v48, %v325_v46 }
 0x12a   :  { %336 = vst [vmem:[#allocation7] sm:$0xf] %v330_v49 }
 0x12b PF:  { %s337_s3 = sld [smem:[#allocation3]] }
 0x131   :  { %p416_p6 = scmp.eq.s32.totalorder %s337_s3, 0 }
 0x133   :  { %341 = sbr.rel (%p416_p6) target bundleno = 442 (0x1ba), region = 37 }
 0x138   :  { %v352_v50 = vld [vmem:[%s726_s5] sm:$0xf]  ;;  %v584_v51 = vmov 0   ;;  %v342_v53 = vmul.f32 %v532_v47, %v532_v47 }
 0x139   :  { %533 = vset.pattern.permute.xlu0 %v584_v51  ;;  %vm353_vm2 = vcmp.gt.f32.partialorder %v352_v50, 0.5  ;;  %v417_v55 = vld [vmem:[%s723_s2] ss:$0 sm:$0xff] }
 0x13a   :  { %v359_v52 = vsel %vm353_vm2, 1, %v584_v51  ;;  %v343_v54 = vmul.f32 %v342_v53, %v313_v38  ;;  %vm351_vm3 = vcmp.eq.s32.totalorder %v327_v43, %v417_v55 }
 0x13b   :  { %361 = vperm.xlu0 %533, %v359_v52  }
 0x13c   :  { %v357_v56 = vrot.slane %v343_v54, %v328_v45 }
 0x13e   :  { %v358_v57 = vsel %vm351_vm3, %v357_v56, -1.0 }
 0x1b6   :  { %v362_v58 = vpop.permute.xlu0 %361 }
 0x1b7   :  { %vm363_vm4 = vcmp.eq.s32.totalorder %v362_v58, 1 }
 0x1b8   :  { %v364_v59 = vsel %vm363_vm4, %v358_v57, %v330_v49 }
 0x1b9   :  { %365 = vst [vmem:[#allocation7] sm:$0xf] %v364_v59 }
 0x1ba PF:  { %s585_s5 = smov [#allocation7]  }
 0x1bb   :  { %s372_s18 = sshll.u32 %s585_s5, 4  ;;  %s373_s18 = int_to_ptr.vmem [resolvable:$true] %s372_s18 }
 0x1bc   :  { %s554_s19 = scalar_lea.vmem %s373_s18, 64  ;;  %p559_p8 = scmp.lt.s32.totalorder %s373_s18, %s373_s18 }
 0x1bd   :  { %p555_p7 = scmp.ne.s32.totalorder %s373_s18, %s554_s19  ;;  %p560_p9 = scmp.lt.s32.totalorder %s554_s19, %s554_s19 }
 0x1bf   :  { %p561_p10 = por %p560_p9, %p559_p8 }
 0x1c1   :  { %p562_p11 = pnand %p561_p10, %p555_p7 }
 0x1c3   :  { %565 = shalt.err (!%p562_p11)
}
 0x1c4   :  { %375 = dma.vmem_to_hbm [thread:$0]  %s373_s18, 64, %s728_s7, [#allocation6]  }
 0x1c5   :  { %576 = dma.done.wait [#allocation6], 64  }
 0x1c6   :  { %577 = vsyncadd [#allocation6], 4294967232 }
 0x1c7   :  { %379 = vsyncpa [#allocation5], 1 }
 0x1c8   :  { %380 = vsyncpa [#allocation6], 1 }

</bundles_post_ra>
